<compile_context>
chip_gen: v7x
topology: tpu7x:2x2x1
jax: 0.10.0
libtpu: 0.0.40
codegen_flags: <defaults>
</compile_context>

<pallas_src>
import functools

import jax
import jax.numpy as jnp
from jax.experimental import pallas as pl
from jax.experimental.pallas import tpu as pltpu


_TN = 256                                  # output-channel tile (lane-dense, multiple of 128)
_VMEM_LIMIT_BYTES = 48 * 1024 * 1024       # explicit, safe on v7x (64 MiB physical)


def _round_up(x, m):
    return (x + m - 1) // m * m


# ----------------------------------------------------------------------------
# Pallas kernels
# ----------------------------------------------------------------------------

def _conv_gemm_kernel(*refs, tap_map, num_streams, l_out, apply_relu, has_residual):
    """Fused conv-as-GEMM: in-kernel im2col over shifted views + bias/residual/ReLU.

    refs = stream_refs[num_streams], w_ref (K, C_in_pad, tn), bias_ref (1, tn),
           [res_ref (1, l_out, tn)], o_ref (1, l_out, tn)
    """
    streams = refs[:num_streams]
    w_ref = refs[num_streams]
    bias_ref = refs[num_streams + 1]
    res_ref = refs[num_streams + 2] if has_residual else None
    o_ref = refs[num_streams + 2 + int(has_residual)]

    acc = None
    for t, (si, off) in enumerate(tap_map):
        # Static shifted window of the phase stream: (l_out, C_in_pad) bf16.
        a = streams[si][0, pl.ds(off, l_out), :]
        part = jnp.dot(a, w_ref[t], preferred_element_type=jnp.float32)
        acc = part if acc is None else acc + part

    out = acc + bias_ref[...]                       # (1, tn) broadcasts over rows
    if has_residual:
        out = out + res_ref[0].astype(jnp.float32)  # fused shortcut add
    if apply_relu:
        out = jnp.maximum(out, 0.0)
    o_ref[0] = out.astype(o_ref.dtype)


def _maxpool3_kernel(s0_ref, s1_ref, o_ref, *, l_out):
    # out[l] = max(xp[2l], xp[2l+1], xp[2l+2]) via two phase streams.
    a = s0_ref[0, pl.ds(0, l_out), :]
    b = s1_ref[0, pl.ds(0, l_out), :]
    c = s0_ref[0, pl.ds(1, l_out), :]
    o_ref[0] = jnp.maximum(jnp.maximum(a, b), c)


# ----------------------------------------------------------------------------
# pallas_call wrappers
# ----------------------------------------------------------------------------

def _conv_gemm(streams, wk, bias2, residual, *, tap_map, l_out, relu, out_dtype):
    """streams: list of (B, L_s, C_in_pad) bf16; wk: (K, C_in_pad, C_out_pad) bf16;
    bias2: (1, C_out_pad) f32; residual: optional (B, l_out, C_out_pad) bf16."""
    B = streams[0].shape[0]
    K, C_in_pad, C_out_pad = wk.shape
    tn = min(_TN, C_out_pad)
    assert C_out_pad % tn == 0
    grid = (B, C_out_pad // tn)

    in_specs = [pl.BlockSpec((1,) + s.shape[1:], lambda b, n: (b, 0, 0)) for s in streams]
    in_specs.append(pl.BlockSpec((K, C_in_pad, tn), lambda b, n: (0, 0, n)))
    in_specs.append(pl.BlockSpec((1, tn), lambda b, n: (0, n)))
    args = list(streams) + [wk, bias2]
    if residual is not None:
        in_specs.append(pl.BlockSpec((1, l_out, tn), lambda b, n: (b, 0, n)))
        args.append(residual)

    kernel = functools.partial(
        _conv_gemm_kernel, tap_map=tuple(tap_map), num_streams=len(streams),
        l_out=l_out, apply_relu=relu, has_residual=residual is not None)

    return pl.pallas_call(
        kernel,
        out_shape=jax.ShapeDtypeStruct((B, l_out, C_out_pad), out_dtype),
        grid=grid,
        in_specs=in_specs,
        out_specs=pl.BlockSpec((1, l_out, tn), lambda b, n: (b, 0, n)),
        compiler_params=pltpu.CompilerParams(
            dimension_semantics=("parallel", "parallel"),
            vmem_limit_bytes=_VMEM_LIMIT_BYTES,
        ),
    )(*args)


def conv_bn_act(x, w, scale, bias, *, stride, padding, relu,
                residual=None, out_dtype=jnp.bfloat16):
    """Conv1d(bias=False) + folded BatchNorm + optional fused residual + ReLU.

    x: (B, L, C_in_pad) bf16 channels-last (padded channels are zero).
    w: (C_out, C_in, K) f32 PyTorch-layout conv weight; scale/bias: folded BN.
    """
    B, L, C_in_pad = x.shape
    C_out, C_in, K = w.shape
    assert C_in <= C_in_pad
    C_out_pad = _round_up(C_out, 128)

    # Host-side prep: fold BN scale into weights, channels-last per tap, zero-pad
    # channels so the GEMM output stays lane-dense and padded lanes stay exactly 0.
    w_f = w * scale[:, None, None]                                   # (C_out, C_in, K)
    wk = jnp.transpose(w_f, (2, 1, 0))                               # (K, C_in, C_out)
    wk = jnp.pad(wk, ((0, 0), (0, C_in_pad - C_in), (0, C_out_pad - C_out)))
    wk = wk.astype(jnp.bfloat16)
    bias2 = jnp.pad(bias, (0, C_out_pad - C_out)).reshape(1, C_out_pad).astype(jnp.float32)

    # Length padding + phase decimation: tap t of a stride-S conv reads phase
    # (t % S) at static offset (t // S), so the kernel only needs unit-stride
    # shifted views.
    Lp = L + 2 * padding
    L_out = (Lp - K) // stride + 1
    xp = jnp.pad(x, ((0, 0), (padding, padding), (0, 0))) if padding > 0 else x
    phases = sorted({t % stride for t in range(K)})
    phase_pos = {r: i for i, r in enumerate(phases)}
    streams = [xp[:, r::stride, :] if stride > 1 else xp for r in phases]
    tap_map = [(phase_pos[t % stride], t // stride) for t in range(K)]

    return _conv_gemm(streams, wk, bias2, residual,
                      tap_map=tap_map, l_out=L_out, relu=relu, out_dtype=out_dtype)


def maxpool1d_k3s2p1(x):
    """MaxPool1d(kernel_size=3, stride=2, padding=1) on (B, L, C_pad) input."""
    B, L, C_pad = x.shape
    L_out = (L + 2 - 3) // 2 + 1
    xp = jnp.pad(x, ((0, 0), (1, 1), (0, 0)), constant_values=-jnp.inf)
    s0, s1 = xp[:, 0::2, :], xp[:, 1::2, :]
    kernel = functools.partial(_maxpool3_kernel, l_out=L_out)
    return pl.pallas_call(
        kernel,
        out_shape=jax.ShapeDtypeStruct((B, L_out, C_pad), x.dtype),
        grid=(B,),
        in_specs=[
            pl.BlockSpec((1,) + s0.shape[1:], lambda b: (b, 0, 0)),
            pl.BlockSpec((1,) + s1.shape[1:], lambda b: (b, 0, 0)),
        ],
        out_specs=pl.BlockSpec((1, L_out, C_pad), lambda b: (b, 0, 0)),
        compiler_params=pltpu.CompilerParams(
            dimension_semantics=("parallel",),
            vmem_limit_bytes=_VMEM_LIMIT_BYTES,
        ),
    )(s0, s1)


def fc_with_avgpool(x, fc_w, fc_b):
    """AdaptiveAvgPool1d(1) + flatten + Linear fused into one Pallas GEMM.

    x: (B, L, C) bf16 with C a multiple of 128. The mean over L is folded into
    the FC weights (tiled L times, scaled by 1/L); the GEMM runs directly on the
    flattened (B, L*C) activations with the batch axis on the GEMM row axis.
    """
    B, L, C = x.shape
    num_classes = fc_w.shape[0]
    N_pad = _round_up(num_classes, 128)
    wt = jnp.pad(fc_w.T, ((0, 0), (0, N_pad - num_classes)))         # (C, N_pad)
    w_eff = (jnp.tile(wt, (L, 1)) / float(L)).astype(jnp.bfloat16)   # (L*C, N_pad)
    wk = w_eff[None]                                                 # (1, L*C, N_pad)
    bias2 = jnp.pad(fc_b, (0, N_pad - num_classes)).reshape(1, N_pad).astype(jnp.float32)
    xf = x.reshape(1, B, L * C)
    out = _conv_gemm([xf], wk, bias2, None, tap_map=[(0, 0)], l_out=B,
                     relu=False, out_dtype=jnp.float32)              # (1, B, N_pad)
    return out[0, :, :num_classes]


# ----------------------------------------------------------------------------
# Model
# ----------------------------------------------------------------------------

def basic_block(x, p):
    stride = p["stride"]
    out = conv_bn_act(x, p["conv1_w"], p["bn1_scale"], p["bn1_bias"],
                      stride=stride, padding=1, relu=True)
    if "sc_w" in p:
        sc = conv_bn_act(x, p["sc_w"], p["sc_scale"], p["sc_bias"],
                         stride=stride, padding=0, relu=False)
    else:
        sc = x                      # identity shortcut (same channels, stride 1)
    # conv2 + bn2 with the residual add + ReLU fused into the GEMM epilogue.
    return conv_bn_act(out, p["conv2_w"], p["bn2_scale"], p["bn2_bias"],
                       stride=1, padding=1, relu=True, residual=sc)


def resnet18_forward(params, x_ncl):
    """x_ncl: (B, C_in, L) float32 in PyTorch NCL layout (interface only)."""
    B, C_in, L = x_ncl.shape
    C_in_pad = _round_up(C_in, 128)
    # One transpose at the boundary; everything downstream stays channels-last bf16.
    x = jnp.transpose(x_ncl, (0, 2, 1))
    x = jnp.pad(x, ((0, 0), (0, 0), (0, C_in_pad - C_in))).astype(jnp.bfloat16)

    x = conv_bn_act(x, params["conv1_w"], params["bn1_scale"], params["bn1_bias"],
                    stride=2, padding=3, relu=True)
    x = maxpool1d_k3s2p1(x)
    for layer in params["layers"]:
        for blk in layer:
            x = basic_block(x, blk)
    return fc_with_avgpool(x, params["fc_w"], params["fc_b"])        # (B, num_classes)


# ----------------------------------------------------------------------------
# Deterministic parameter initialization (synthetic)
# ----------------------------------------------------------------------------

def init_params(key, input_channels, num_classes):
    keys = iter(jax.random.split(key, 256))

    def conv_w(cout, cin, k):
        return 0.05 * jax.random.normal(next(keys), (cout, cin, k), jnp.float32)

    def bn_fold(c):
        gamma = 1.0 + 0.1 * jax.random.normal(next(keys), (c,), jnp.float32)
        beta = 0.1 * jax.random.normal(next(keys), (c,), jnp.float32)
        mean = 0.1 * jax.random.normal(next(keys), (c,), jnp.float32)
        var = jnp.abs(1.0 + 0.1 * jax.random.normal(next(keys), (c,), jnp.float32))
        scale = gamma / jnp.sqrt(var + 1e-5)
        bias = beta - mean * scale
        return scale, bias

    params = {}
    params["conv1_w"] = conv_w(64, input_channels, 7)
    params["bn1_scale"], params["bn1_bias"] = bn_fold(64)

    layer_cfgs = [(64, 64, 1), (64, 128, 2), (128, 256, 2), (256, 512, 2)]
    layers = []
    for (cin, cout, stride) in layer_cfgs:
        blocks = []
        for b in range(2):
            blk_in = cin if b == 0 else cout
            blk_stride = stride if b == 0 else 1
            blk = {"stride": blk_stride}
            blk["conv1_w"] = conv_w(cout, blk_in, 3)
            blk["bn1_scale"], blk["bn1_bias"] = bn_fold(cout)
            blk["conv2_w"] = conv_w(cout, cout, 3)
            blk["bn2_scale"], blk["bn2_bias"] = bn_fold(cout)
            if blk_stride != 1 or blk_in != cout:
                blk["sc_w"] = conv_w(cout, blk_in, 1)
                blk["sc_scale"], blk["sc_bias"] = bn_fold(cout)
            blocks.append(blk)
        layers.append(blocks)
    params["layers"] = layers

    params["fc_w"] = 0.05 * jax.random.normal(next(keys), (num_classes, 512), jnp.float32)
    params["fc_b"] = 0.05 * jax.random.normal(next(keys), (num_classes,), jnp.float32)
    return params


# ----------------------------------------------------------------------------
# Main
# ----------------------------------------------------------------------------

if __name__ == "__main__":
    B, C_IN, L, NUM_CLASSES = 2, 4, 64, 10
    key = jax.random.PRNGKey(0)
    pkey, xkey = jax.random.split(key)
    params = init_params(pkey, C_IN, NUM_CLASSES)
    x = jax.random.normal(xkey, (B, C_IN, L), jnp.float32)

    logits = resnet18_forward(params, x)
    logits = jax.block_until_ready(logits)
    assert logits.shape == (B, NUM_CLASSES)
    assert bool(jnp.all(jnp.isfinite(logits)))
    print("KERNEL_OK")
</pallas_src>

<mosaic_0001>
module attributes {stable_mosaic.version = 11 : i64} {
  func.func @_conv_gemm_kernel(%arg0: i32, %arg1: i32, %arg2: memref<1x35x128xbf16, #tpu.memory_space<vmem>>, %arg3: memref<1x35x128xbf16, #tpu.memory_space<vmem>>, %arg4: memref<7x128x128xbf16, #tpu.memory_space<vmem>>, %arg5: memref<1x128xf32, #tpu.memory_space<vmem>>, %arg6: memref<1x32x128xbf16, #tpu.memory_space<vmem>>) attributes {dimension_semantics = [#tpu.dimension_semantics<parallel>, #tpu.dimension_semantics<parallel>], iteration_bounds = array<i64: 2, 1>, scalar_prefetch = 0 : i64, scratch_operands = 0 : i64, tpu.core_type = #tpu.core_type<tc>, window_params = [{transform_indices = @transform_0, window_bounds = array<i64: 1, 35, 128>}, {transform_indices = @transform_1, window_bounds = array<i64: 1, 35, 128>}, {transform_indices = @transform_2, window_bounds = array<i64: 7, 128, 128>}, {transform_indices = @transform_3, window_bounds = array<i64: 1, 128>}, {transform_indices = @transform_4, window_bounds = array<i64: 1, 32, 128>}]} {
    %c0 = arith.constant 0 : index
    %c0_0 = arith.constant 0 : index
    %c0_1 = arith.constant 0 : index
    %0 = vector.load %arg2[%c0, %c0_0, %c0_1] : memref<1x35x128xbf16, #tpu.memory_space<vmem>>, vector<1x32x128xbf16>
    %1 = vector.shape_cast %0 : vector<1x32x128xbf16> to vector<32x128xbf16>
    %c0_2 = arith.constant 0 : index
    %c0_3 = arith.constant 0 : index
    %c0_4 = arith.constant 0 : index
    %2 = vector.load %arg4[%c0_2, %c0_3, %c0_4] : memref<7x128x128xbf16, #tpu.memory_space<vmem>>, vector<1x128x128xbf16>
    %3 = vector.shape_cast %2 : vector<1x128x128xbf16> to vector<128x128xbf16>
    %cst = arith.constant dense<0.000000e+00> : vector<32x128xf32>
    %4 = tpu.matmul %1, %3, %cst {dimension_numbers = #tpu.dot_dimension_numbers<[1], [0], [0], [1], [0, 0, 1, 1], [], []>} : vector<32x128xbf16>, vector<128x128xbf16>, vector<32x128xf32> -> vector<32x128xf32>
    %c0_5 = arith.constant 0 : index
    %c0_6 = arith.constant 0 : index
    %c0_7 = arith.constant 0 : index
    %5 = vector.load %arg3[%c0_5, %c0_6, %c0_7] : memref<1x35x128xbf16, #tpu.memory_space<vmem>>, vector<1x32x128xbf16>
    %6 = vector.shape_cast %5 : vector<1x32x128xbf16> to vector<32x128xbf16>
    %c1 = arith.constant 1 : index
    %c0_8 = arith.constant 0 : index
    %c0_9 = arith.constant 0 : index
    %7 = vector.load %arg4[%c1, %c0_8, %c0_9] : memref<7x128x128xbf16, #tpu.memory_space<vmem>>, vector<1x128x128xbf16>
    %8 = vector.shape_cast %7 : vector<1x128x128xbf16> to vector<128x128xbf16>
    %cst_10 = arith.constant dense<0.000000e+00> : vector<32x128xf32>
    %9 = tpu.matmul %6, %8, %cst_10 {dimension_numbers = #tpu.dot_dimension_numbers<[1], [0], [0], [1], [0, 0, 1, 1], [], []>} : vector<32x128xbf16>, vector<128x128xbf16>, vector<32x128xf32> -> vector<32x128xf32>
    %10 = arith.addf %4, %9 : vector<32x128xf32>
    %c0_11 = arith.constant 0 : index
    %c1_12 = arith.constant 1 : index
    %c0_13 = arith.constant 0 : index
    %11 = vector.load %arg2[%c0_11, %c1_12, %c0_13] : memref<1x35x128xbf16, #tpu.memory_space<vmem>>, vector<1x32x128xbf16>
    %12 = vector.shape_cast %11 : vector<1x32x128xbf16> to vector<32x128xbf16>
    %c2 = arith.constant 2 : index
    %c0_14 = arith.constant 0 : index
    %c0_15 = arith.constant 0 : index
    %13 = vector.load %arg4[%c2, %c0_14, %c0_15] : memref<7x128x128xbf16, #tpu.memory_space<vmem>>, vector<1x128x128xbf16>
    %14 = vector.shape_cast %13 : vector<1x128x128xbf16> to vector<128x128xbf16>
    %cst_16 = arith.constant dense<0.000000e+00> : vector<32x128xf32>
    %15 = tpu.matmul %12, %14, %cst_16 {dimension_numbers = #tpu.dot_dimension_numbers<[1], [0], [0], [1], [0, 0, 1, 1], [], []>} : vector<32x128xbf16>, vector<128x128xbf16>, vector<32x128xf32> -> vector<32x128xf32>
    %16 = arith.addf %10, %15 : vector<32x128xf32>
    %c0_17 = arith.constant 0 : index
    %c1_18 = arith.constant 1 : index
    %c0_19 = arith.constant 0 : index
    %17 = vector.load %arg3[%c0_17, %c1_18, %c0_19] : memref<1x35x128xbf16, #tpu.memory_space<vmem>>, vector<1x32x128xbf16>
    %18 = vector.shape_cast %17 : vector<1x32x128xbf16> to vector<32x128xbf16>
    %c3 = arith.constant 3 : index
    %c0_20 = arith.constant 0 : index
    %c0_21 = arith.constant 0 : index
    %19 = vector.load %arg4[%c3, %c0_20, %c0_21] : memref<7x128x128xbf16, #tpu.memory_space<vmem>>, vector<1x128x128xbf16>
    %20 = vector.shape_cast %19 : vector<1x128x128xbf16> to vector<128x128xbf16>
    %cst_22 = arith.constant dense<0.000000e+00> : vector<32x128xf32>
    %21 = tpu.matmul %18, %20, %cst_22 {dimension_numbers = #tpu.dot_dimension_numbers<[1], [0], [0], [1], [0, 0, 1, 1], [], []>} : vector<32x128xbf16>, vector<128x128xbf16>, vector<32x128xf32> -> vector<32x128xf32>
    %22 = arith.addf %16, %21 : vector<32x128xf32>
    %c0_23 = arith.constant 0 : index
    %c2_24 = arith.constant 2 : index
    %c0_25 = arith.constant 0 : index
    %23 = vector.load %arg2[%c0_23, %c2_24, %c0_25] : memref<1x35x128xbf16, #tpu.memory_space<vmem>>, vector<1x32x128xbf16>
    %24 = vector.shape_cast %23 : vector<1x32x128xbf16> to vector<32x128xbf16>
    %c4 = arith.constant 4 : index
    %c0_26 = arith.constant 0 : index
    %c0_27 = arith.constant 0 : index
    %25 = vector.load %arg4[%c4, %c0_26, %c0_27] : memref<7x128x128xbf16, #tpu.memory_space<vmem>>, vector<1x128x128xbf16>
    %26 = vector.shape_cast %25 : vector<1x128x128xbf16> to vector<128x128xbf16>
    %cst_28 = arith.constant dense<0.000000e+00> : vector<32x128xf32>
    %27 = tpu.matmul %24, %26, %cst_28 {dimension_numbers = #tpu.dot_dimension_numbers<[1], [0], [0], [1], [0, 0, 1, 1], [], []>} : vector<32x128xbf16>, vector<128x128xbf16>, vector<32x128xf32> -> vector<32x128xf32>
    %28 = arith.addf %22, %27 : vector<32x128xf32>
    %c0_29 = arith.constant 0 : index
    %c2_30 = arith.constant 2 : index
    %c0_31 = arith.constant 0 : index
    %29 = vector.load %arg3[%c0_29, %c2_30, %c0_31] : memref<1x35x128xbf16, #tpu.memory_space<vmem>>, vector<1x32x128xbf16>
    %30 = vector.shape_cast %29 : vector<1x32x128xbf16> to vector<32x128xbf16>
    %c5 = arith.constant 5 : index
    %c0_32 = arith.constant 0 : index
    %c0_33 = arith.constant 0 : index
    %31 = vector.load %arg4[%c5, %c0_32, %c0_33] : memref<7x128x128xbf16, #tpu.memory_space<vmem>>, vector<1x128x128xbf16>
    %32 = vector.shape_cast %31 : vector<1x128x128xbf16> to vector<128x128xbf16>
    %cst_34 = arith.constant dense<0.000000e+00> : vector<32x128xf32>
    %33 = tpu.matmul %30, %32, %cst_34 {dimension_numbers = #tpu.dot_dimension_numbers<[1], [0], [0], [1], [0, 0, 1, 1], [], []>} : vector<32x128xbf16>, vector<128x128xbf16>, vector<32x128xf32> -> vector<32x128xf32>
    %34 = arith.addf %28, %33 : vector<32x128xf32>
    %c0_35 = arith.constant 0 : index
    %c3_36 = arith.constant 3 : index
    %c0_37 = arith.constant 0 : index
    %35 = vector.load %arg2[%c0_35, %c3_36, %c0_37] : memref<1x35x128xbf16, #tpu.memory_space<vmem>>, vector<1x32x128xbf16>
    %36 = vector.shape_cast %35 : vector<1x32x128xbf16> to vector<32x128xbf16>
    %c6 = arith.constant 6 : index
    %c0_38 = arith.constant 0 : index
    %c0_39 = arith.constant 0 : index
    %37 = vector.load %arg4[%c6, %c0_38, %c0_39] : memref<7x128x128xbf16, #tpu.memory_space<vmem>>, vector<1x128x128xbf16>
    %38 = vector.shape_cast %37 : vector<1x128x128xbf16> to vector<128x128xbf16>
    %cst_40 = arith.constant dense<0.000000e+00> : vector<32x128xf32>
    %39 = tpu.matmul %36, %38, %cst_40 {dimension_numbers = #tpu.dot_dimension_numbers<[1], [0], [0], [1], [0, 0, 1, 1], [], []>} : vector<32x128xbf16>, vector<128x128xbf16>, vector<32x128xf32> -> vector<32x128xf32>
    %40 = arith.addf %34, %39 : vector<32x128xf32>
    %c0_41 = arith.constant 0 : index
    %c0_42 = arith.constant 0 : index
    %41 = vector.load %arg5[%c0_41, %c0_42] : memref<1x128xf32, #tpu.memory_space<vmem>>, vector<1x128xf32>
    %42 = vector.broadcast %41 : vector<1x128xf32> to vector<32x128xf32>
    %43 = arith.addf %40, %42 : vector<32x128xf32>
    %cst_43 = arith.constant 0.000000e+00 : f32
    %44 = vector.broadcast %cst_43 : f32 to vector<32x128xf32>
    %45 = arith.maximumf %43, %44 : vector<32x128xf32>
    %46 = arith.truncf %45 : vector<32x128xf32> to vector<32x128xbf16>
    %c0_44 = arith.constant 0 : index
    %c0_45 = arith.constant 0 : index
    %c0_46 = arith.constant 0 : index
    %47 = vector.load %arg6[%c0_44, %c0_45, %c0_46] : memref<1x32x128xbf16, #tpu.memory_space<vmem>>, vector<1x32x128xbf16>
    %48 = vector.shape_cast %47 : vector<1x32x128xbf16> to vector<32x128xbf16>
    %49 = vector.shape_cast %46 : vector<32x128xbf16> to vector<1x32x128xbf16>
    tpu.vector_store %arg6[%c0_44, %c0_45, %c0_46], %49 {strides = array<i32>} : memref<1x32x128xbf16, #tpu.memory_space<vmem>>, vector<1x32x128xbf16>,
    return
  }
  func.func @transform_0(%arg0: i32, %arg1: i32) -> (i32, i32, i32) {
    %c0_i32 = arith.constant 0 : i32
    %c0_i32_0 = arith.constant 0 : i32
    %c0_i32_1 = arith.constant 0 : i32
    return %arg0, %c0_i32, %c0_i32_0 : i32, i32, i32
  }
  func.func @transform_1(%arg0: i32, %arg1: i32) -> (i32, i32, i32) {
    %c0_i32 = arith.constant 0 : i32
    %c0_i32_0 = arith.constant 0 : i32
    %c0_i32_1 = arith.constant 0 : i32
    return %arg0, %c0_i32, %c0_i32_0 : i32, i32, i32
  }
  func.func @transform_2(%arg0: i32, %arg1: i32) -> (i32, i32, i32) {
    %c0_i32 = arith.constant 0 : i32
    %c0_i32_0 = arith.constant 0 : i32
    %c0_i32_1 = arith.constant 0 : i32
    return %c0_i32, %c0_i32_0, %arg1 : i32, i32, i32
  }
  func.func @transform_3(%arg0: i32, %arg1: i32) -> (i32, i32) {
    %c0_i32 = arith.constant 0 : i32
    %c0_i32_0 = arith.constant 0 : i32
    return %c0_i32, %arg1 : i32, i32
  }
  func.func @transform_4(%arg0: i32, %arg1: i32) -> (i32, i32, i32) {
    %c0_i32 = arith.constant 0 : i32
    %c0_i32_0 = arith.constant 0 : i32
    return %arg0, %c0_i32, %arg1 : i32, i32, i32
  }
}

</mosaic_0001>

<bundles_post_ra>
// kernel: tpu_custom_call.1
= control target key start
LH: loop header
LB: loop body
LE: loop exit
PB: predicated region body
PF: predicated region fallthrough
CT: control target
= control target key end

     0   :  { %9 = vsyncpa [#allocation3], 0  ;;  %s2261_s0 = inlined_call_operand.vmem [shape: bf16[2,35,128], index: 0, kind: input, shape index: {}]   ;;  %s2262_s1 = inlined_call_operand.vmem [shape: bf16[2,35,128], index: 1, kind: input, shape index: {}]   ;;  %s2263_s2 = inlined_call_operand.hbm [shape: bf16[7,128,128], index: 2, kind: input, shape index: {}]   ;;  %s2264_s3 = inlined_call_operand.vmem [shape: f32[1,128], index: 3, kind: input, shape index: {}]   ;;  %s2265_s4 = inlined_call_operand.hbm [shape: bf16[2,32,128], index: 4, kind: output, shape index: {}]  }
   0x1   :  { %10 = vsyncpa [#allocation4], 0 }
   0x2   :  { %12 = vsyncpa [#allocation4 + $0x1], 0  ;;  %s2031_s15 = smov 0   ;;  %s2033_s16 = smov 0  }
   0x3   :  { %s2035_s17 = smov 0   ;;  %s2037_s18 = smov 0  }
   0x4   :  { %s2039_s19 = smov 0   ;;  %s2041_s20 = smov 0  }
   0x5 LB: > { %s1408_s21 = sadd.s32 4294967295, %s1998_s20   ;;  %s1409_s22 = sadd.s32 4294967294, %s1998_s20   ;;  %s1998_s20 = sphi %s2041_s20, %s18_s20   ;;  %s1994_s19 = sphi %s2039_s19, %s2283_s19   ;;  %s1990_s18 = sphi %s2037_s18, %s2282_s18   ;;  %s1986_s17 = sphi %s2035_s17, %s2281_s17   ;;  %s1982_s16 = sphi %s2033_s16, %s2280_s16   ;;  %s1978_s15 = sphi %s2031_s15, %s2279_s15  }
   0x6   : > { %s30_s23 = sadd.s32 1, %s1994_s19  ;;  %s143_s24 = sadd.s32 1, %s1986_s17 }
   0x7   : > { %p32_p0 = scmp.ge.s32.totalorder %s30_s23, 2  ;;  %p153_p1 = scmp.ne.s32.totalorder %s1986_s17, %s1982_s16 }
   0x8   : > { %p154_p2 = scmp.eq.s32.totalorder %s1408_s21, 1  ;;  %p159_p3 = scmp.ne.s32.totalorder %s1982_s16, %s1978_s15 }
   0x9   : > { %s2285_s23 = smov (%p32_p0, %s30_s23), 0  ;;  %p160_p5 = scmp.eq.s32.totalorder %s1409_s22, 1 }
   0xa   : > { %p2071_p4 = por %p154_p2, %p153_p1  ;;  %s138_s26 = ssub.s32 %s1994_s19, %s2285_s23 }
   0xb   : > { %p1410_p6 = scmp.ge.s32.totalorder %s1998_s20, 1  ;;  %p141_p7 = scmp.eq.s32.totalorder %s138_s26, 0 }
   0xc   : > { %s2270_s25 = scalar_select %p2071_p4, 1, 0 }
   0xd   : > { %p2078_p8 = por %p160_p5, %p159_p3  ;;  %p167_p9 = scmp.lt.s32.totalorder %s1998_s20, 3 }
   0xe   : > { %s2084_s28 = scalar_select %p141_p7, %s1986_s17, %s143_s24  }
   0xf   : > { %s2271_s27 = scalar_select %p2078_p8, 1, 0 }
  0x10   : > { %p2086_p10 = pnand %p1410_p6, %p167_p9  ;;  %p2090_p11 = scmp.eq.s32.totalorder %s1408_s21, 0 }
  0x11   : > { %s2000_s5 = smov [#allocation2]   ;;  %s1888_s10 = scalar_lea.hbm %s2263_s2, 7168 }
  0x12   : > { %s2272_s29 = scalar_select %p2086_p10, 1, 0 }
  0x13   : > { %s2273_s30 = scalar_select %p2090_p11, 1, 0 }
  0x14   : > { %p1755_p12 = pneg %p2086_p10  ;;  %s181_s6 = sshll.u32 %s2000_s5, 4  ;;  %s182_s6 = int_to_ptr.vmem [resolvable:$true] %s181_s6 }
  0x15   : > { %p1889_p0 = scmp.ne.s32.totalorder %s2263_s2, %s1888_s10  ;;  %p1895_p5 = scmp.lt.u32.totalorder %s1888_s10, %s2263_s2 }
  0x16   : > { %p2098_p13 = pnand %p2090_p11, %p1755_p12 }
  0x18   : > { %p1890_p1 = pneg %p2098_p13 }
  0x1a   : > { %p1891_p2 = pnand %p1890_p1, %p1889_p0 }
  0x1c   : > { %p1892_p3 = pneg %p1891_p2 }
  0x1e   : > { %p1897_p6 = pnand %p1895_p5, %p1892_p3 }
  0x20   : > { %1900 = shalt.err (!%p1897_p6)
}
  0x21   : > { %s1901_s21 = scalar_lea.vmem %s182_s6, 7168  ;;  %p1909_p8 = scmp.lt.s32.totalorder %s182_s6, %s182_s6 }
  0x22   : > { %p1902_p7 = scmp.ne.s32.totalorder %s182_s6, %s1901_s21  ;;  %p1910_p4 = scmp.lt.s32.totalorder %s1901_s21, %s1901_s21 }
  0x24   : > { %p1904_p9 = pnand %p1902_p7, %p1890_p1  ;;  %p1911_p11 = por %p1910_p4, %p1909_p8 }
  0x26   : > { %p1905_p12 = pneg %p1904_p9 }
  0x28   : > { %p1912_p10 = pnand %p1911_p11, %p1905_p12 }
  0x2a   : > { %1915 = shalt.err (!%p1912_p10)
}
  0x2b   : > { %s2001_s22 = smov 64   ;;  %s2002_s24 = smov 4  }
  0x2c   : > { %1758 = dma.hbm_to_vmem [thread:$0]  (!%p2098_p13), %s2263_s2, 7168, %s182_s6, [#allocation3], %s2001_s22, %s2001_s22, %s2002_s24  }
  0x2d   : > { %p2275_p0 = scmp.ne.s32.totalorder %s2272_s29, 0 }
  0x2e   : > { %p2276_p2 = scmp.ne.s32.totalorder (!%p2275_p0), %s2273_s30, 0 }
  0x2f   : > { %219 = sbr.rel (%p2275_p0) target bundleno = 423 (0x1a7), region = 36 }
  0x36   : > { %1969 = dma.done.wait (%p2276_p2), [#allocation3], 7168  }
  0x37   : > { %1971 = vsyncadd (%p2276_p2), [#allocation3], 4294960128  ;;  %v1819_v0 = vld [vmem:[#allocation2 + $0x40] sm:$0xff]   ;;  %v1821_v2 = vld [vmem:[#allocation2 + $0x48] sm:$0xff]   ;;  %p253_p4 = scmp.lt.s32.totalorder %s1990_s18, 1  ;;  %vm864_vm1 = vcmask 1046528  }
  0x38   : > { %v1820_v1 = vld [vmem:[#allocation2 + $0xc0] sm:$0xff]   ;;  %1584 = vmatprep.subr.bf16.mxu1 %v1819_v0  ;;  %v1822_v3 = vld [vmem:[#allocation2 + $0xc8] sm:$0xff]   ;;  %v1823_v4 = vld [vmem:[#allocation2 + $0x50] sm:$0xff]   ;;  %vm561_vm0 = vsmask.f32 7424  ;;  %s250_s12 = sand.u32 1, %s1982_s16  }
  0x39   : > { %1644 = vmatprep.subr.bf16.mxu0 %v1820_v1  ;;  %1585 = vmatpush3.bf16.msra.mxu1 %v1819_v0  ;;  %v1824_v5 = vld [vmem:[#allocation2 + $0xd0] sm:$0xff]   ;;  %s2126_s29 = scalar_select %p253_p4, %s1990_s18, 1  ;;  %v1825_v6 = vld [vmem:[#allocation2 + $0x58] sm:$0xff]   ;;  %v1827_v8 = vld [vmem:[#allocation2 + $0x60] sm:$0xff]   ;;  %vm1123_vm2 = vsmask.f32 6400 }
  0x3a   : > { %1645 = vmatpush3.bf16.msra.mxu0 %v1820_v1  ;;  %1586 = vmatprep.subr.bf16.mxu1 %v1821_v2  ;;  %v1826_v7 = vld [vmem:[#allocation2 + $0xd8] sm:$0xff]   ;;  %v1828_v9 = vld [vmem:[#allocation2 + $0xe0] sm:$0xff]   ;;  %v1829_v10 = vld [vmem:[#allocation2 + $0x68] sm:$0xff]   ;;  %s1416_s21 = sshll.u32 %s250_s12, 4  ;;  %s1502_s26 = sshll.u32 %s1990_s18, 8 }
  0x3b   : > { %1646 = vmatprep.subr.bf16.mxu0 %v1822_v3  ;;  %s1748_s30 = smul.u32 20, %s2126_s29  ;;  %v1830_v12 = vld [vmem:[#allocation2 + $0xe8] sm:$0xff]   ;;  %v1831_v17 = vld [vmem:[#allocation2 + $0x70] sm:$0xff]   ;;  %v1833_v22 = vld [vmem:[#allocation2 + $0x78] sm:$0xff]   ;;  %s252_s22 = scalar_lea.vmem [#allocation5], %s1416_s21 }
  0x3c   : > { %v1832_v18 = vld [vmem:[#allocation2 + $0xf0] sm:$0xff]   ;;  %v1834_v28 = vld [vmem:[#allocation2 + $0xf8] sm:$0xff]   ;;  %v1836_v31 = vld [vmem:[#allocation2] sm:$0xff]   ;;  %s1298_s24 = sshll.u32 %s252_s22, 4  ;;  %s2215_s6 = scalar_lea.sflag [#allocation4], %s250_s12  ;;  %s2208_s24 = int_to_ptr.vmem [resolvable:$true] %s1298_s24 }
  0x3d   : > { %1587 = vmatpush3.bf16.msra.mxu1 %v1821_v2  ;;  %s2134_s8 = scalar_lea.vmem %s2262_s1, %s1748_s30  ;;  %v1839_v34 = vld [vmem:[#allocation2 + $0x100] sm:$0xff]   ;;  %v1842_v37 = vld [vmem:[#allocation2 + $0x8] sm:$0xff]   ;;  %s2159_s11 = scalar_lea.vmem %s2261_s0, %s1748_s30  ;;  %v1844_v39 = vld [vmem:[#allocation2 + $0x10] sm:$0xff]  }
  0x3e   : > { %1647 = vmatpush3.bf16.msra.mxu0 %v1822_v3  ;;  %1588 = vmatprep.subr.bf16.mxu1 %v1823_v4  ;;  %v1835_v11 = vld [vmem:[%s2134_s8] sm:$0xff]   ;;  %v2143_v16 = vld [vmem:[%s2134_s8 + $0x8] sm:$0xff]   ;;  %v2147_v23 = vld [vmem:[%s2134_s8 + $0x10] ss:$0 sps:$4 sm:$0x11]   ;;  %s2213_s30 = scalar_lea.hbm %s2265_s4, %s1502_s26  ;;  %s1916_s18 = scalar_lea.vmem %s2208_s24, 256 }
  0x3f   : > { %1648 = vmatprep.subr.bf16.mxu0 %v1824_v5  ;;  %1600 = vmatprep.mubr.bf16.mxu1 %v1835_v11  ;;  %v685_v13 = vld [vmem:[%s2134_s8] sm:$0xf]  ;;  %v2139_v14 = vld [vmem:[%s2134_s8 + $0x4] sm:$0xf]  ;;  %v728_v21 = vshll.u32 %v2143_v16, 16  ;;  %v732_v26 = vshrl.u32 %v2143_v16, 16  ;;  %p1917_p8 = scmp.ne.s32.totalorder %s2208_s24, %s1916_s18 }
  0x40   : > { %v1450_v15 = vcombine.low %v685_v13, %v2139_v14  ;;  %v736_v27 = vshll.u32 %v2147_v23, 16  ;;  %v1840_v35 = vld [vmem:[%s2134_s8 + $0x8] sm:$0xff]   ;;  %v1843_v38 = vld [vmem:[#allocation2 + $0x108] sm:$0xff]   ;;  %v1845_v40 = vld [vmem:[#allocation2 + $0x110] sm:$0xff]   ;;  %p2277_p10 = scmp.ne.s32.totalorder %s2270_s25, 0  ;;  %s2003_s7 = smov [#allocation5]  }
  0x41   : > { %1589 = vmatpush3.bf16.msra.mxu1 %v1823_v4  ;;  %v730_v25 = vrot.slane %v728_v21, 1  ;;  %v1856_v41 = vld [vmem:[%s2159_s11] sm:$0xff]   ;;  %v2164_v44 = vld [vmem:[%s2159_s11 + $0x8] sm:$0xff]   ;;  %v1850_v53 = vld [vmem:[#allocation2 + $0x28] sm:$0xff]  }
  0x42   : > { %1649 = vmatpush3.bf16.msra.mxu0 %v1824_v5  ;;  %1590 = vmatprep.subr.bf16.mxu1 %v1825_v6  ;;  %v721_v19 = vshrl.u32 %v1450_v15, 16  ;;  %v723_v20 = vshll.u32 %v1450_v15, 16  ;;  %v738_v33 = vrot.slane %v736_v27, 1  ;;  %v1846_v42 = vld [vmem:[#allocation2 + $0x18] sm:$0xff]   ;;  %v866_v48 = vrot.slane %v2164_v44, 1  ;;  %v1848_v50 = vld [vmem:[#allocation2 + $0x20] sm:$0xff]   ;;  %p1918_p11 = pnand %p1917_p8, %p2277_p10 }
  0x43   : > { %1650 = vmatprep.subr.bf16.mxu0 %v1826_v7  ;;  %v734_v32 = vor.u32 %v732_v26, %v730_v25  ;;  %v527_v43 = vld [vmem:[%s2159_s11 + $0x4] sm:$0xf]  ;;  %v843_v45 = vld [vmem:[%s2159_s11] sm:$0xe]  ;;  %v1849_v51 = vld [vmem:[#allocation2 + $0x120] sm:$0xff]   ;;  %v570_v60 = vshll.u32 %v2164_v44, 16 }
  0x44   : > { %v725_v24 = vrot.slane %v723_v20, 1  ;;  %v1847_v46 = vld [vmem:[#allocation2 + $0x118] sm:$0xff]   ;;  %v2167_v47 = vcombine.low %v843_v45, %v527_v43  ;;  %v1851_v54 = vld [vmem:[#allocation2 + $0x128] sm:$0xff]   ;;  %v1852_v55 = vld [vmem:[#allocation2 + $0x30] sm:$0xff]   ;;  %p1919_p13 = pneg %p1918_p11 }
  0x45   : > { %1591 = vmatpush3.bf16.msra.mxu1 %v1825_v6  ;;  %v739_v36 = vsel %vm561_vm0, %v734_v32, %v738_v33  ;;  %v1853_v56 = vld [vmem:[#allocation2 + $0x130] sm:$0xff]   ;;  %v2173_v57 = vld [vmem:[%s2159_s11 + $0x10] ss:$0 sps:$4 sm:$0x11]   ;;  %v1854_v58 = vld [vmem:[#allocation2 + $0x38] sm:$0xff]   ;;  %v995_v6 = vrot.slane %v2143_v16, 1 }
  0x46   : > { %1651 = vmatpush3.bf16.msra.mxu0 %v1826_v7  ;;  %1592 = vmatprep.subr.bf16.mxu1 %v1827_v8  ;;  %v726_v29 = vor.u32 %v725_v24, %v721_v19  ;;  %v865_v49 = vrot.slane %v2167_v47, 1  ;;  %v1855_v59 = vld [vmem:[#allocation2 + $0x138] sm:$0xff]   ;;  %v1857_v1 = vld [vmem:[#allocation2 + $0x80] sm:$0xff]   ;;  %v868_v2 = vrot.slane %v2173_v57, 1  ;;  %v1864_v13 = vld [vmem:[#allocation2 + $0x148] sm:$0xff]   ;;  %v578_v32 = vshll.u32 %v2173_v57, 16 }
  0x47   : > { %1652 = vmatprep.subr.bf16.mxu0 %v1828_v9  ;;  %v526_v61 = vld [vmem:[%s2159_s11] sm:$0xf]  ;;  %v1860_v3 = vld [vmem:[#allocation2 + $0x140] sm:$0xff]   ;;  %v1866_v19 = vld [vmem:[#allocation2 + $0x150] sm:$0xff]  }
  0x48   : > { %v731_v30 = vsel %vm561_vm0, %v726_v29, %v730_v25  ;;  %v867_v52 = vsel %vm864_vm1, %v865_v49, %v866_v48  ;;  %v973_v62 = vld [vmem:[%s2134_s8] sm:$0xe]  ;;  %v1439_v63 = vcombine.low %v526_v61, %v527_v43  ;;  %v1861_v7 = vld [vmem:[%s2159_s11 + $0x8] sm:$0xff]   ;;  %v869_v11 = vsel %vm864_vm1, %v866_v48, %v868_v2  ;;  %v1871_v25 = vld [vmem:[#allocation2 + $0xa8] sm:$0xff]   ;;  %s1920_s8 = sshll.u32 %s2003_s7, 4  ;;  %s1921_s8 = int_to_ptr.vmem [resolvable:$false] %s1920_s8 }
  0x49   : > { %1593 = vmatpush3.bf16.msra.mxu1 %v1827_v8  ;;  %1660 = vmatprep.mubr.bf16.mxu0 %v731_v30  ;;  %v1470_v0 = vcombine.low %v973_v62, %v2139_v14  ;;  %v572_v8 = vrot.slane %v570_v60, 1  ;;  %v1867_v20 = vld [vmem:[#allocation2 + $0x98] sm:$0xff]   ;;  %v1870_v24 = vld [vmem:[#allocation2 + $0x160] sm:$0xff]   ;;  %v1872_v26 = vld [vmem:[#allocation2 + $0x168] sm:$0xff]   ;;  %v1125_v29 = vshrl.u32 %v2167_v47, 16  ;;  %v1128_v30 = vshll.u32 %v2167_v47, 16  ;;  %p1923_p1 = scmp.lt.s32.totalorder %s2208_s24, %s1921_s8 }
  0x4a   : > { %1653 = vmatpush3.bf16.msra.mxu0 %v1828_v9  ;;  %1594 = vmatprep.subr.bf16.mxu1 %v1829_v10  ;;  %v563_v4 = vshrl.u32 %v1439_v63, 16  ;;  %v565_v5 = vshll.u32 %v1439_v63, 16  ;;  %v1868_v21 = vld [vmem:[#allocation2 + $0x158] sm:$0xff]   ;;  %v1873_v27 = vld [vmem:[#allocation2 + $0xb0] sm:$0xff]   ;;  %v1880_v47 = vld [vmem:[#allocation2 + $0x188] sm:$0xff]   ;;  %s1922_s9 = scalar_lea.vmem %s1921_s8, 512 }
  0x4b   : > { %1654 = vmatprep.subr.bf16.mxu0 %v1830_v12  ;;  %v1875_v33 = vld [vmem:[#allocation2 + $0xb8] sm:$0xff]   ;;  %v1887_v16 = vld [vmem:[%s2159_s11 + $0x10] ss:$0 sps:$4 sm:$0x33]   ;;  %p1924_p3 = scmp.lt.s32.totalorder %s1922_s9, %s1916_s18 }
  0x4c   : > { %v567_v9 = vrot.slane %v565_v5, 1  ;;  %v1882_v49 = vld [vmem:[#allocation2 + $0x198] sm:$0xff]  }
  0x4d   : > { %1595 = vmatpush3.bf16.msra.mxu1 %v1829_v10  ;;  %v994_v10 = vrot.slane %v1470_v0, 1  ;;  %v1886_v57 = vld [vmem:[#allocation2 + $0x1b8] sm:$0xff]   ;;  %p1925_p5 = por %p1924_p3, %p1923_p1 }
  0x4e   : > { %1655 = vmatpush3.bf16.msra.mxu0 %v1830_v12  ;;  %1596 = vmatprep.subr.bf16.mxu1 %v1831_v17  ;;  %v1863_v12 = vld [vmem:[#allocation2 + $0x88] sm:$0xff]   ;;  %v568_v14 = vor.u32 %v567_v9, %v563_v4 }
  0x4f   : > { %1656 = vmatprep.subr.bf16.mxu0 %v1832_v18  ;;  %p1926_p6 = pnand %p1925_p5, %p1919_p13 }
  0x50   : > { %v573_v15 = vsel %vm561_vm0, %v568_v14, %v572_v8 }
  0x51   : > { %1597 = vmatpush3.bf16.msra.mxu1 %v1831_v17  ;;  %v996_v17 = vsel %vm864_vm1, %v994_v10, %v995_v6 }
  0x52   : > { %1657 = vmatpush3.bf16.msra.mxu0 %v1832_v18  ;;  %1598 = vmatprep.subr.bf16.mxu1 %v1833_v22  ;;  %v1865_v18 = vld [vmem:[#allocation2 + $0x90] sm:$0xff]  }
  0x53   : > { %1658 = vmatprep.subr.bf16.mxu0 %v1834_v28 }
  0x55   : > { %1599 = vmatpush3.bf16.msra.mxu1 %v1833_v22  ;;  %v1869_v22 = vld [vmem:[#allocation2 + $0xa0] sm:$0xff]  }
  0x56   : > { %1659 = vmatpush3.bf16.msra.mxu0 %v1834_v28  ;;  %1604 = vmatprep.subr.bf16.mxu1 %v1836_v31  ;;  %v1874_v28 = vld [vmem:[#allocation2 + $0x170] sm:$0xff]  }
  0x57   : > { %1664 = vmatprep.subr.bf16.mxu0 %v1839_v34 }
  0x58   : > { %1601 = vmatmul.mubr.bf16.vlgmr.msra.gmra.mrb[0].mxu1 %v1840_v35  ;;  %v1127_v35 = vrot.slane %v1125_v29, 1 }
  0x59   : > { %1605 = vmatpush3.bf16.msra.mxu1 %v1836_v31  ;;  %1661 = vmatmul.mubr.bf16.vlgmr.msra.gmra.mrb[0].mxu0 %v739_v36  ;;  %v574_v31 = vshrl.u32 %v2164_v44, 16  ;;  %v1130_v36 = vrot.slane %v1128_v30, 2 }
  0x5a   : > { %1665 = vmatpush3.bf16.msra.mxu0 %v1839_v34  ;;  %1606 = vmatprep.subr.bf16.mxu1 %v1842_v37  ;;  %v1876_v34 = vld [vmem:[#allocation2 + $0x178] sm:$0xff]  }
  0x5b   : > { %1666 = vmatprep.subr.bf16.mxu0 %v1843_v38  ;;  %1620 = vmatprep.mubr.bf16.mxu1 %v1856_v41  ;;  %v997_v41 = vrot.slane %v2147_v23, 1  ;;  %v1131_v43 = vor.u32 %v1130_v36, %v1127_v35  ;;  %v1881_v23 = vld [vmem:[#allocation2 + $0x190] sm:$0xff]  }
  0x5c   : > { %1680 = vmatprep.mubr.bf16.mxu0 %v867_v52  ;;  %v1137_v52 = vshrl.u32 %v1887_v16, 16 }
  0x5d   : > { %1607 = vmatpush3.bf16.msra.mxu1 %v1842_v37  ;;  %v1132_v37 = vrot.slane %v574_v31, 1  ;;  %v998_v44 = vsel %vm864_vm1, %v995_v6, %v997_v41 }
  0x5e   : > { %1667 = vmatpush3.bf16.msra.mxu0 %v1843_v38  ;;  %1608 = vmatprep.subr.bf16.mxu1 %v1844_v39  ;;  %v1133_v38 = vrot.slane %v570_v60, 2 }
  0x5f   : > { %1668 = vmatprep.subr.bf16.mxu0 %v1845_v40 }
  0x60   : > { %v1134_v45 = vor.u32 %v1133_v38, %v1132_v37 }
  0x61   : > { %1609 = vmatpush3.bf16.msra.mxu1 %v1844_v39  ;;  %v576_v39 = vor.u32 %v574_v31, %v572_v8 }
  0x62   : > { %1669 = vmatpush3.bf16.msra.mxu0 %v1845_v40  ;;  %1610 = vmatprep.subr.bf16.mxu1 %v1846_v42  ;;  %v580_v40 = vrot.slane %v578_v32, 1  ;;  %v1135_v48 = vsel %vm1123_vm2, %v1131_v43, %v1134_v45 }
  0x63   : > { %1670 = vmatprep.subr.bf16.mxu0 %v1847_v46 }
  0x65   : > { %1611 = vmatpush3.bf16.msra.mxu1 %v1846_v42  ;;  %v1879_v42 = vld [vmem:[#allocation2 + $0x180] sm:$0xff]  }
  0x66   : > { %1671 = vmatpush3.bf16.msra.mxu0 %v1847_v46  ;;  %1612 = vmatprep.subr.bf16.mxu1 %v1848_v50  ;;  %v581_v46 = vsel %vm561_vm0, %v576_v39, %v580_v40 }
  0x67   : > { %1672 = vmatprep.subr.bf16.mxu0 %v1849_v51 }
  0x69   : > { %1613 = vmatpush3.bf16.msra.mxu1 %v1848_v50  ;;  %v1883_v50 = vld [vmem:[#allocation2 + $0x1a0] sm:$0xff]  }
  0x6a   : > { %1673 = vmatpush3.bf16.msra.mxu0 %v1849_v51  ;;  %1614 = vmatprep.subr.bf16.mxu1 %v1850_v53  ;;  %v1884_v51 = vld [vmem:[#allocation2 + $0x1a8] sm:$0xff]  }
  0x6b   : > { %1674 = vmatprep.subr.bf16.mxu0 %v1851_v54 }
  0x6d   : > { %1615 = vmatpush3.bf16.msra.mxu1 %v1850_v53  ;;  %v1140_v53 = vshll.u32 %v1887_v16, 16 }
  0x6e   : > { %1675 = vmatpush3.bf16.msra.mxu0 %v1851_v54  ;;  %1616 = vmatprep.subr.bf16.mxu1 %v1852_v55  ;;  %v1885_v54 = vld [vmem:[#allocation2 + $0x1b0] sm:$0xff]  }
  0x6f   : > { %1676 = vmatprep.subr.bf16.mxu0 %v1853_v56 }
  0x71   : > { %1617 = vmatpush3.bf16.msra.mxu1 %v1852_v55  ;;  %v1139_v55 = vrot.slane %v1137_v52, 1 }
  0x72   : > { %1677 = vmatpush3.bf16.msra.mxu0 %v1853_v56  ;;  %1618 = vmatprep.subr.bf16.mxu1 %v1854_v58  ;;  %v1142_v56 = vrot.slane %v1140_v53, 2 }
  0x73   : > { %1678 = vmatprep.subr.bf16.mxu0 %v1855_v59 }
  0x75   : > { %1619 = vmatpush3.bf16.msra.mxu1 %v1854_v58  ;;  %v1143_v58 = vor.u32 %v1142_v56, %v1139_v55 }
  0x76   : > { %1679 = vmatpush3.bf16.msra.mxu0 %v1855_v59  ;;  %1624 = vmatprep.subr.bf16.mxu1 %v1857_v1 }
  0x77   : > { %1684 = vmatprep.subr.bf16.mxu0 %v1860_v3  ;;  %v1144_v59 = vsel %vm1123_vm2, %v1134_v45, %v1143_v58 }
  0x78   : > { %1621 = vmatmul.mubr.bf16.vlgmr.msra.gmra.mrb[0].mxu1 %v1861_v7 }
  0x79   : > { %1625 = vmatpush3.bf16.msra.mxu1 %v1857_v1  ;;  %1681 = vmatmul.mubr.bf16.vlgmr.msra.gmra.mrb[0].mxu0 %v869_v11  ;;  %v1488_v1 = vld [vmem:[%s2264_s3] ss:$0 sm:$0xff] }
  0x7a   : > { %1685 = vmatpush3.bf16.msra.mxu0 %v1860_v3  ;;  %1626 = vmatprep.subr.bf16.mxu1 %v1863_v12 }
  0x7b   : > { %1686 = vmatprep.subr.bf16.mxu0 %v1864_v13  ;;  %1640 = vmatprep.mubr.bf16.mxu1 %v573_v15 }
  0x7c   : > { %1700 = vmatprep.mubr.bf16.mxu0 %v996_v17 }
  0x7d   : > { %1627 = vmatpush3.bf16.msra.mxu1 %v1863_v12 }
  0x7e   : > { %1687 = vmatpush3.bf16.msra.mxu0 %v1864_v13  ;;  %1628 = vmatprep.subr.bf16.mxu1 %v1865_v18 }
  0x7f   : > { %1688 = vmatprep.subr.bf16.mxu0 %v1866_v19 }
  0x81   : > { %1629 = vmatpush3.bf16.msra.mxu1 %v1865_v18 }
  0x82   : > { %1689 = vmatpush3.bf16.msra.mxu0 %v1866_v19  ;;  %1630 = vmatprep.subr.bf16.mxu1 %v1867_v20 }
  0x83   : > { %1690 = vmatprep.subr.bf16.mxu0 %v1868_v21 }
  0x85   : > { %1631 = vmatpush3.bf16.msra.mxu1 %v1867_v20 }
  0x86   : > { %1691 = vmatpush3.bf16.msra.mxu0 %v1868_v21  ;;  %1632 = vmatprep.subr.bf16.mxu1 %v1869_v22 }
  0x87   : > { %1692 = vmatprep.subr.bf16.mxu0 %v1870_v24 }
  0x89   : > { %1633 = vmatpush3.bf16.msra.mxu1 %v1869_v22 }
  0x8a   : > { %1693 = vmatpush3.bf16.msra.mxu0 %v1870_v24  ;;  %1634 = vmatprep.subr.bf16.mxu1 %v1871_v25 }
  0x8b   : > { %1694 = vmatprep.subr.bf16.mxu0 %v1872_v26 }
  0x8d   : > { %1635 = vmatpush3.bf16.msra.mxu1 %v1871_v25 }
  0x8e   : > { %1695 = vmatpush3.bf16.msra.mxu0 %v1872_v26  ;;  %1636 = vmatprep.subr.bf16.mxu1 %v1873_v27 }
  0x8f   : > { %1696 = vmatprep.subr.bf16.mxu0 %v1874_v28 }
  0x91   : > { %1637 = vmatpush3.bf16.msra.mxu1 %v1873_v27 }
  0x92   : > { %1697 = vmatpush3.bf16.msra.mxu0 %v1874_v28  ;;  %1638 = vmatprep.subr.bf16.mxu1 %v1875_v33 }
  0x93   : > { %1698 = vmatprep.subr.bf16.mxu0 %v1876_v34 }
  0x95   : > { %1639 = vmatpush3.bf16.msra.mxu1 %v1875_v33 }
  0x96   : > { %1699 = vmatpush3.bf16.msra.mxu0 %v1876_v34 }
  0x97   : > { %1704 = vmatprep.subr.bf16.mxu0 %v1879_v42 }
  0x98   : > { %1641 = vmatmul.mubr.bf16.vlgmr.msra.gmra.mrb[0].mxu1 %v581_v46 }
  0x99   : > { %1701 = vmatmul.mubr.bf16.vlgmr.msra.gmra.mrb[0].mxu0 %v998_v44 }
  0x9a   : > { %1705 = vmatpush3.bf16.msra.mxu0 %v1879_v42  ;;  %1720 = vmatprep.mubr.bf16.mxu0 %v1135_v48 }
  0x9b   : > { %1706 = vmatprep.subr.bf16.mxu0 %v1880_v47 }
  0x9e   : > { %1707 = vmatpush3.bf16.msra.mxu0 %v1880_v47 }
  0x9f   : > { %1708 = vmatprep.subr.bf16.mxu0 %v1881_v23 }
  0xa2   : > { %1709 = vmatpush3.bf16.msra.mxu0 %v1881_v23 }
  0xa3   : > { %1710 = vmatprep.subr.bf16.mxu0 %v1882_v49 }
  0xa6   : > { %1711 = vmatpush3.bf16.msra.mxu0 %v1882_v49 }
  0xa7   : > { %1712 = vmatprep.subr.bf16.mxu0 %v1883_v50 }
  0xaa   : > { %1713 = vmatpush3.bf16.msra.mxu0 %v1883_v50 }
  0xab   : > { %1714 = vmatprep.subr.bf16.mxu0 %v1884_v51 }
  0xae   : > { %1715 = vmatpush3.bf16.msra.mxu0 %v1884_v51 }
  0xaf   : > { %1716 = vmatprep.subr.bf16.mxu0 %v1885_v54 }
  0xb2   : > { %1717 = vmatpush3.bf16.msra.mxu0 %v1885_v54 }
  0xb3   : > { %1718 = vmatprep.subr.bf16.mxu0 %v1886_v57 }
  0xb6   : > { %1719 = vmatpush3.bf16.msra.mxu0 %v1886_v57 }
  0xb9   : > { %1721 = vmatmul.mubr.bf16.vlgmr.msra.gmra.mrb[0].mxu0 %v1144_v59 }
 0x16b   : > { %v1642_v60 = vpop.f32.mrb[0].mxu1 }
 0x16c   : > { %v666_v61 = vpop.f32.mrb[1].mxu1 }
 0x16d   : > { %v1643_v62 = vpop.f32.mrb[2].mxu1 }
 0x16e   : > { %v669_v63 = vpop.f32.mrb[3].mxu1 }
 0x18c   : > { %v1722_v0 = vpop.f32.mrb[0].mxu0 }
 0x18d   : > { %v1724_v2 = vadd.f32 %v1722_v0, %v1642_v60  ;;  %v1229_v3 = vpop.f32.mrb[1].mxu0 }
 0x18e   : > { %v1725_v4 = vadd.f32 %v1229_v3, %v666_v61  ;;  %v1723_v5 = vpop.f32.mrb[2].mxu0 }
 0x18f   : > { %v1257_v6 = vadd.f32 %v1724_v2, %v1488_v1  ;;  %v1726_v7 = vadd.f32 %v1723_v5, %v1643_v62  ;;  %v1232_v8 = vpop.f32.mrb[3].mxu0 }
 0x190   : > { %v1255_v9 = vadd.f32 %v1725_v4, %v1488_v1  ;;  %v1727_v10 = vadd.f32 %v1232_v8, %v669_v63 }
 0x191   : > { %v1258_v11 = vadd.f32 %v1726_v7, %v1488_v1  ;;  %v1261_v13 = vmax.f32 %v1257_v6, 0.0 }
 0x192   : > { %v1256_v12 = vadd.f32 %v1727_v10, %v1488_v1  ;;  %v1259_v15 = vmax.f32 %v1255_v9, 0.0 }
 0x193   : > { %v1262_v14 = vmax.f32 %v1258_v11, 0.0 }
 0x194   : > { %v1260_v17 = vmax.f32 %v1256_v12, 0.0 }
 0x195   : > { %v1511_v18 = vpack.c.bf16 %v1262_v14, %v1261_v13 }
 0x196   : > { %v1506_v19 = vpack.c.bf16 %v1260_v17, %v1259_v15 }
 0x197   : > { %1513 = vst [vmem:[%s252_s22 + $0x8] sm:$0xff] %v1511_v18  }
 0x198   : > { %1507 = vst [vmem:[%s252_s22] sm:$0xff] %v1506_v19  }
 0x199   : > { %1929 = shalt.err (!%p1926_p6)
}
 0x19a   : > { %s1930_s10 = scalar_lea.hbm %s2213_s30, 256  ;;  %s1934_s13 = scalar_lea.hbm %s2265_s4, 512 }
 0x19b   : > { %p1931_p7 = scmp.ne.s32.totalorder %s2213_s30, %s1930_s10  ;;  %p1935_p0 = scmp.lt.u32.totalorder %s2213_s30, %s2265_s4 }
 0x19c   : > { %p1936_p2 = scmp.lt.u32.totalorder %s1934_s13, %s1930_s10  ;;  %p1938_p8 = scmp.lt.u32.totalorder %s1930_s10, %s2213_s30 }
 0x19d   : > { %p1932_p9 = pnand %p1931_p7, %p2277_p10 }
 0x19e   : > { %p1937_p4 = por %p1936_p2, %p1935_p0 }
 0x19f   : > { %p1933_p12 = pneg %p1932_p9 }
 0x1a0   : > { %p1939_p11 = por %p1938_p8, %p1937_p4 }
 0x1a2   : > { %p1940_p13 = pnand %p1939_p11, %p1933_p12 }
 0x1a4   : > { %1943 = shalt.err (!%p1940_p13)
}
 0x1a5   : > { %s2004_s22 = smov 64   ;;  %s2005_s26 = smov 4  }
 0x1a6   : > { %1753 = dma.vmem_to_hbm [thread:$0]  (%p2277_p10), %s2208_s24, 256, %s2213_s30, %s2215_s6, %s2004_s22, %s2004_s22, %s2005_s26  }
 0x1a7 PF: > { %p1765_p1 = scmp.ge.s32.totalorder %s1998_s20, 2  ;;  %s1313_s5 = sand.u32 1, %s1978_s15  }
 0x1a8   : > { %p2278_p3 = scmp.ne.s32.totalorder %s2271_s27, 0  ;;  %s1314_s29 = scalar_lea.sflag [#allocation4], %s1313_s5 }
 0x1aa   : > { %p1760_p5 = pnand %p1765_p1, %p2278_p3 }
 0x1ac   : > { %1973 = dma.done.wait (!%p1760_p5), %s1314_s29, 256  }
 0x1ad   : > { %1975 = vsyncadd (!%p1760_p5), %s1314_s29, 4294967040  ;;  %s18_s20 = sadd.s32 1, %s1998_s20   ;;  %s2279_s15 = smov %s1982_s16 }
 0x1ae   : > { %p15_p6 = scmp.ge.s32.totalorder %s18_s20, 4   ;;  %s2280_s16 = smov %s1986_s17 }
 0x1af   : > { %s2281_s17 = smov %s2084_s28  ;;  %s2282_s18 = smov %s1994_s19 }
 0x1b0   : > { %s2283_s19 = smov %s2285_s23  ;;  %17 = sbr.rel (!%p15_p6) target bundleno = 5 (0x5), region = 89 }
 0x1b7   :  { %1319 = vsyncpa [#allocation3], 1 }
 0x1b8   :  { %1321 = vsyncpa [#allocation3 + $0x1], 1 }
 0x1b9   :  { %1322 = vsyncpa [#allocation4], 1 }
 0x1ba   :  { %1324 = vsyncpa [#allocation4 + $0x1], 1 }

</bundles_post_ra>
